<compile_context>
chip_gen: v6e
topology: v6e:2x2x1
jax: 0.10.0
libtpu: 0.0.40
codegen_flags: <defaults>
</compile_context>

<pallas_src>
import math

import jax
import jax.numpy as jnp
from jax.experimental import pallas as pl
from jax.experimental.pallas import tpu as pltpu


INPUT_DIMS = 11
FC1_DIMS = 32
FC2_DIMS = 64
FC3_DIMS = 32
N_ACTIONS = 2

_LAYER_DIMS = (
    (INPUT_DIMS, FC1_DIMS),
    (FC1_DIMS, FC2_DIMS),
    (FC2_DIMS, FC3_DIMS),
    (FC3_DIMS, N_ACTIONS),
)

_LANE = 128


def _mlp_kernel(x_ref,
                w1_ref, b1_ref,
                w2_ref, b2_ref,
                w3_ref, b3_ref,
                w4_ref, b4_ref,
                o_ref):
    # Feature-major: x is (11, tb), weights are (out, in), biases (out, 1).
    x = x_ref[...]
    h = jnp.dot(w1_ref[...], x, preferred_element_type=jnp.float32)
    h = jnp.maximum(h + b1_ref[...], 0.0)
    h = jnp.dot(w2_ref[...], h, preferred_element_type=jnp.float32)
    h = jnp.maximum(h + b2_ref[...], 0.0)
    h = jnp.dot(w3_ref[...], h, preferred_element_type=jnp.float32)
    h = jnp.maximum(h + b3_ref[...], 0.0)
    h = jnp.dot(w4_ref[...], h, preferred_element_type=jnp.float32)
    o_ref[...] = jnp.tanh(h + b4_ref[...])          # (2, tb), lane-dense store


def _round_up(n, m):
    return ((n + m - 1) // m) * m


def _choose_tiling(batch, max_tile, split_threshold=1024):
    """Pick (tile, padded_batch): minimal 128-lane padding, tile <= max_tile,
    and >= 2 grid steps for large batches so v7x's two TCs both get work."""
    bp_min = _round_up(max(batch, 1), _LANE)
    max_tile = max(_round_up(max_tile, _LANE), _LANE)
    n_steps = pl.cdiv(bp_min, max_tile)
    if bp_min >= split_threshold:
        n_steps = max(n_steps, 2)
    tb = _round_up(pl.cdiv(bp_min, n_steps), _LANE)
    return tb, tb * n_steps


def net_forward(state, params, *, block_b=4096):
    """Fused Net.forward.

    state : (B, 11) float32 (batch-major, PyTorch convention)
    params: dict with w1..w4 as PyTorch-layout (out, in) f32 arrays and
            b1..b4 as (out, 1) f32 arrays.
    returns (B, 2) float32.
    """
    B = state.shape[0]
    tb, bp = _choose_tiling(B, block_b)

    # Feature-major input: (11, Bp).  Transpose + pad at the wrapper boundary.
    x = state.T
    if bp != B:
        x = jnp.pad(x, ((0, 0), (0, bp - B)))

    w1, w2, w3, w4 = params["w1"], params["w2"], params["w3"], params["w4"]
    b1, b2, b3, b4 = params["b1"], params["b2"], params["b3"], params["b4"]

    def _resident(shape):
        # Same block every grid step -> stays VMEM-resident, no per-step DMA.
        return pl.BlockSpec(shape, lambda i: (0, 0))

    flops = 2 * bp * sum(fi * fo for fi, fo in _LAYER_DIMS)
    bytes_accessed = (
        bp * INPUT_DIMS * 4 + bp * N_ACTIONS * 4
        + sum(fi * fo * 4 + fo * 4 for fi, fo in _LAYER_DIMS))

    out = pl.pallas_call(
        _mlp_kernel,
        out_shape=jax.ShapeDtypeStruct((N_ACTIONS, bp), jnp.float32),
        grid=(bp // tb,),
        in_specs=[
            pl.BlockSpec((INPUT_DIMS, tb), lambda i: (0, i)),
            _resident((FC1_DIMS, INPUT_DIMS)), _resident((FC1_DIMS, 1)),
            _resident((FC2_DIMS, FC1_DIMS)), _resident((FC2_DIMS, 1)),
            _resident((FC3_DIMS, FC2_DIMS)), _resident((FC3_DIMS, 1)),
            _resident((N_ACTIONS, FC3_DIMS)), _resident((N_ACTIONS, 1)),
        ],
        out_specs=pl.BlockSpec((N_ACTIONS, tb), lambda i: (0, i)),
        compiler_params=pltpu.CompilerParams(
            dimension_semantics=("parallel",)),
        cost_estimate=pl.CostEstimate(
            flops=flops,
            transcendentals=bp * N_ACTIONS,
            bytes_accessed=bytes_accessed),
    )(x, w1, b1, w2, b2, w3, b3, w4, b4)

    # Back to batch-major (B, 2); padded columns are garbage -> slice them off.
    return out[:, :B].T


def _xavier_uniform(key, fan_out, fan_in):
    # Matches torch.nn.init.xavier_uniform_ on a (out, in) weight.
    bound = math.sqrt(6.0 / (fan_in + fan_out))
    return jax.random.uniform(key, (fan_out, fan_in), jnp.float32, -bound, bound)


def init_params(key):
    k1, k2, k3, k4 = jax.random.split(key, 4)
    return {
        "w1": _xavier_uniform(k1, FC1_DIMS, INPUT_DIMS),
        "b1": jnp.full((FC1_DIMS, 1), 0.01, jnp.float32),
        "w2": _xavier_uniform(k2, FC2_DIMS, FC1_DIMS),
        "b2": jnp.full((FC2_DIMS, 1), 0.01, jnp.float32),
        "w3": _xavier_uniform(k3, FC3_DIMS, FC2_DIMS),
        "b3": jnp.full((FC3_DIMS, 1), 0.01, jnp.float32),
        "w4": _xavier_uniform(k4, N_ACTIONS, FC3_DIMS),
        "b4": jnp.full((N_ACTIONS, 1), 0.01, jnp.float32),
    }


def _reference_forward(state, params):
    # Pure-JAX reference, PyTorch semantics: y = x @ W.T + b.
    h = jnp.maximum(state @ params["w1"].T + params["b1"].T, 0.0)
    h = jnp.maximum(h @ params["w2"].T + params["b2"].T, 0.0)
    h = jnp.maximum(h @ params["w3"].T + params["b3"].T, 0.0)
    return jnp.tanh(h @ params["w4"].T + params["b4"].T)


if __name__ == "__main__":
    key = jax.random.PRNGKey(0)
    pkey, xkey1, xkey2, xkey3 = jax.random.split(key, 4)
    params = init_params(pkey)

    # Small batch: single 128-lane tile, grid=1.
    batch = 8
    state = jax.random.normal(xkey1, (batch, INPUT_DIMS), jnp.float32)
    out = jax.block_until_ready(net_forward(state, params))
    ref = _reference_forward(state, params)
    assert out.shape == (batch, N_ACTIONS)
    assert jnp.allclose(out, ref, atol=1e-4, rtol=1e-4)

    # Ragged batch: pads only to 384 (not 512), grid=1.
    batch2 = 300
    state2 = jax.random.normal(xkey2, (batch2, INPUT_DIMS), jnp.float32)
    out2 = jax.block_until_ready(net_forward(state2, params))
    ref2 = _reference_forward(state2, params)
    assert out2.shape == (batch2, N_ACTIONS)
    assert jnp.allclose(out2, ref2, atol=1e-4, rtol=1e-4)

    # Large batch: split into 2 parallel grid steps (feeds both v7x TCs).
    batch3 = 1536
    state3 = jax.random.normal(xkey3, (batch3, INPUT_DIMS), jnp.float32)
    out3 = jax.block_until_ready(net_forward(state3, params))
    ref3 = _reference_forward(state3, params)
    assert out3.shape == (batch3, N_ACTIONS)
    assert jnp.allclose(out3, ref3, atol=1e-4, rtol=1e-4)

    print("KERNEL_OK")
</pallas_src>

<mosaic_0001>
module attributes {stable_mosaic.version = 11 : i64} {
  func.func @_mlp_kernel(%arg0: i32, %arg1: memref<11x128xf32, #tpu.memory_space<vmem>>, %arg2: memref<32x11xf32, #tpu.memory_space<vmem>>, %arg3: memref<32x1xf32, #tpu.memory_space<vmem>>, %arg4: memref<64x32xf32, #tpu.memory_space<vmem>>, %arg5: memref<64x1xf32, #tpu.memory_space<vmem>>, %arg6: memref<32x64xf32, #tpu.memory_space<vmem>>, %arg7: memref<32x1xf32, #tpu.memory_space<vmem>>, %arg8: memref<2x32xf32, #tpu.memory_space<vmem>>, %arg9: memref<2x1xf32, #tpu.memory_space<vmem>>, %arg10: memref<2x128xf32, #tpu.memory_space<vmem>>) attributes {dimension_semantics = [#tpu.dimension_semantics<parallel>], iteration_bounds = array<i64: 1>, scalar_prefetch = 0 : i64, scratch_operands = 0 : i64, tpu.core_type = #tpu.core_type<tc>, window_params = [{transform_indices = @transform_0, window_bounds = array<i64: 11, 128>}, {pipeline_mode = #tpu.pipeline_mode<synchronous>, transform_indices = @transform_1, window_bounds = array<i64: 32, 11>}, {pipeline_mode = #tpu.pipeline_mode<synchronous>, transform_indices = @transform_2, window_bounds = array<i64: 32, 1>}, {pipeline_mode = #tpu.pipeline_mode<synchronous>, transform_indices = @transform_3, window_bounds = array<i64: 64, 32>}, {pipeline_mode = #tpu.pipeline_mode<synchronous>, transform_indices = @transform_4, window_bounds = array<i64: 64, 1>}, {pipeline_mode = #tpu.pipeline_mode<synchronous>, transform_indices = @transform_5, window_bounds = array<i64: 32, 64>}, {pipeline_mode = #tpu.pipeline_mode<synchronous>, transform_indices = @transform_6, window_bounds = array<i64: 32, 1>}, {pipeline_mode = #tpu.pipeline_mode<synchronous>, transform_indices = @transform_7, window_bounds = array<i64: 2, 32>}, {pipeline_mode = #tpu.pipeline_mode<synchronous>, transform_indices = @transform_8, window_bounds = array<i64: 2, 1>}, {transform_indices = @transform_9, window_bounds = array<i64: 2, 128>}]} {
    %c0 = arith.constant 0 : index
    %c0_0 = arith.constant 0 : index
    %0 = vector.load %arg1[%c0, %c0_0] : memref<11x128xf32, #tpu.memory_space<vmem>>, vector<11x128xf32>
    %c0_1 = arith.constant 0 : index
    %c0_2 = arith.constant 0 : index
    %1 = vector.load %arg2[%c0_1, %c0_2] : memref<32x11xf32, #tpu.memory_space<vmem>>, vector<32x11xf32>
    %cst = arith.constant dense<0.000000e+00> : vector<32x128xf32>
    %2 = tpu.matmul %1, %0, %cst {dimension_numbers = #tpu.dot_dimension_numbers<[1], [0], [0], [1], [0, 0, 1, 1], [], []>} : vector<32x11xf32>, vector<11x128xf32>, vector<32x128xf32> -> vector<32x128xf32>
    %c0_3 = arith.constant 0 : index
    %c0_4 = arith.constant 0 : index
    %3 = vector.load %arg3[%c0_3, %c0_4] : memref<32x1xf32, #tpu.memory_space<vmem>>, vector<32x1xf32>
    %4 = vector.broadcast %3 : vector<32x1xf32> to vector<32x128xf32>
    %5 = arith.addf %2, %4 : vector<32x128xf32>
    %cst_5 = arith.constant 0.000000e+00 : f32
    %6 = vector.broadcast %cst_5 : f32 to vector<32x128xf32>
    %7 = arith.maximumf %5, %6 : vector<32x128xf32>
    %c0_6 = arith.constant 0 : index
    %c0_7 = arith.constant 0 : index
    %8 = vector.load %arg4[%c0_6, %c0_7] : memref<64x32xf32, #tpu.memory_space<vmem>>, vector<64x32xf32>
    %cst_8 = arith.constant dense<0.000000e+00> : vector<64x128xf32>
    %9 = tpu.matmul %8, %7, %cst_8 {dimension_numbers = #tpu.dot_dimension_numbers<[1], [0], [0], [1], [0, 0, 1, 1], [], []>} : vector<64x32xf32>, vector<32x128xf32>, vector<64x128xf32> -> vector<64x128xf32>
    %c0_9 = arith.constant 0 : index
    %c0_10 = arith.constant 0 : index
    %10 = vector.load %arg5[%c0_9, %c0_10] : memref<64x1xf32, #tpu.memory_space<vmem>>, vector<64x1xf32>
    %11 = vector.broadcast %10 : vector<64x1xf32> to vector<64x128xf32>
    %12 = arith.addf %9, %11 : vector<64x128xf32>
    %cst_11 = arith.constant 0.000000e+00 : f32
    %13 = vector.broadcast %cst_11 : f32 to vector<64x128xf32>
    %14 = arith.maximumf %12, %13 : vector<64x128xf32>
    %c0_12 = arith.constant 0 : index
    %c0_13 = arith.constant 0 : index
    %15 = vector.load %arg6[%c0_12, %c0_13] : memref<32x64xf32, #tpu.memory_space<vmem>>, vector<32x64xf32>
    %cst_14 = arith.constant dense<0.000000e+00> : vector<32x128xf32>
    %16 = tpu.matmul %15, %14, %cst_14 {dimension_numbers = #tpu.dot_dimension_numbers<[1], [0], [0], [1], [0, 0, 1, 1], [], []>} : vector<32x64xf32>, vector<64x128xf32>, vector<32x128xf32> -> vector<32x128xf32>
    %c0_15 = arith.constant 0 : index
    %c0_16 = arith.constant 0 : index
    %17 = vector.load %arg7[%c0_15, %c0_16] : memref<32x1xf32, #tpu.memory_space<vmem>>, vector<32x1xf32>
    %18 = vector.broadcast %17 : vector<32x1xf32> to vector<32x128xf32>
    %19 = arith.addf %16, %18 : vector<32x128xf32>
    %cst_17 = arith.constant 0.000000e+00 : f32
    %20 = vector.broadcast %cst_17 : f32 to vector<32x128xf32>
    %21 = arith.maximumf %19, %20 : vector<32x128xf32>
    %c0_18 = arith.constant 0 : index
    %c0_19 = arith.constant 0 : index
    %22 = vector.load %arg8[%c0_18, %c0_19] : memref<2x32xf32, #tpu.memory_space<vmem>>, vector<2x32xf32>
    %cst_20 = arith.constant dense<0.000000e+00> : vector<2x128xf32>
    %23 = tpu.matmul %22, %21, %cst_20 {dimension_numbers = #tpu.dot_dimension_numbers<[1], [0], [0], [1], [0, 0, 1, 1], [], []>} : vector<2x32xf32>, vector<32x128xf32>, vector<2x128xf32> -> vector<2x128xf32>
    %c0_21 = arith.constant 0 : index
    %c0_22 = arith.constant 0 : index
    %24 = vector.load %arg9[%c0_21, %c0_22] : memref<2x1xf32, #tpu.memory_space<vmem>>, vector<2x1xf32>
    %25 = vector.broadcast %24 : vector<2x1xf32> to vector<2x128xf32>
    %26 = arith.addf %23, %25 : vector<2x128xf32>
    %27 = math.tanh %26 : vector<2x128xf32>
    %c0_23 = arith.constant 0 : index
    %c0_24 = arith.constant 0 : index
    %28 = vector.load %arg10[%c0_23, %c0_24] : memref<2x128xf32, #tpu.memory_space<vmem>>, vector<2x128xf32>
    tpu.vector_store %arg10[%c0_23, %c0_24], %27 {strides = array<i32>} : memref<2x128xf32, #tpu.memory_space<vmem>>, vector<2x128xf32>,
    return
  }
  func.func @transform_0(%arg0: i32) -> (i32, i32) {
    %c0_i32 = arith.constant 0 : i32
    %c0_i32_0 = arith.constant 0 : i32
    return %c0_i32, %arg0 : i32, i32
  }
  func.func @transform_1(%arg0: i32) -> (i32, i32) {
    %c0_i32 = arith.constant 0 : i32
    %c0_i32_0 = arith.constant 0 : i32
    %c0_i32_1 = arith.constant 0 : i32
    return %c0_i32, %c0_i32_0 : i32, i32
  }
  func.func @transform_2(%arg0: i32) -> (i32, i32) {
    %c0_i32 = arith.constant 0 : i32
    %c0_i32_0 = arith.constant 0 : i32
    %c0_i32_1 = arith.constant 0 : i32
    return %c0_i32, %c0_i32_0 : i32, i32
  }
  func.func @transform_3(%arg0: i32) -> (i32, i32) {
    %c0_i32 = arith.constant 0 : i32
    %c0_i32_0 = arith.constant 0 : i32
    %c0_i32_1 = arith.constant 0 : i32
    return %c0_i32, %c0_i32_0 : i32, i32
  }
  func.func @transform_4(%arg0: i32) -> (i32, i32) {
    %c0_i32 = arith.constant 0 : i32
    %c0_i32_0 = arith.constant 0 : i32
    %c0_i32_1 = arith.constant 0 : i32
    return %c0_i32, %c0_i32_0 : i32, i32
  }
  func.func @transform_5(%arg0: i32) -> (i32, i32) {
    %c0_i32 = arith.constant 0 : i32
    %c0_i32_0 = arith.constant 0 : i32
    %c0_i32_1 = arith.constant 0 : i32
    return %c0_i32, %c0_i32_0 : i32, i32
  }
  func.func @transform_6(%arg0: i32) -> (i32, i32) {
    %c0_i32 = arith.constant 0 : i32
    %c0_i32_0 = arith.constant 0 : i32
    %c0_i32_1 = arith.constant 0 : i32
    return %c0_i32, %c0_i32_0 : i32, i32
  }
  func.func @transform_7(%arg0: i32) -> (i32, i32) {
    %c0_i32 = arith.constant 0 : i32
    %c0_i32_0 = arith.constant 0 : i32
    %c0_i32_1 = arith.constant 0 : i32
    return %c0_i32, %c0_i32_0 : i32, i32
  }
  func.func @transform_8(%arg0: i32) -> (i32, i32) {
    %c0_i32 = arith.constant 0 : i32
    %c0_i32_0 = arith.constant 0 : i32
    %c0_i32_1 = arith.constant 0 : i32
    return %c0_i32, %c0_i32_0 : i32, i32
  }
  func.func @transform_9(%arg0: i32) -> (i32, i32) {
    %c0_i32 = arith.constant 0 : i32
    %c0_i32_0 = arith.constant 0 : i32
    return %c0_i32, %arg0 : i32, i32
  }
}

</mosaic_0001>

<bundles_post_ra>
// kernel: tpu_custom_call.1
= control target key start
LH: loop header
LB: loop body
LE: loop exit
PB: predicated region body
PF: predicated region fallthrough
CT: control target
= control target key end

     0   :  { %vm76_vm0 = vcmask 1042432   ;;  %vm63_vm1 = vcmask 89088   ;;  %v735_v4 = vmov 0   ;;  %s917_s0 = inlined_call_operand.vmem [shape: f32[11,128], index: 0, kind: input, shape index: {}]   ;;  %s918_s1 = inlined_call_operand.vmem [shape: f32[32,11], index: 1, kind: input, shape index: {}]   ;;  %s919_s2 = inlined_call_operand.vmem [shape: f32[32,1], index: 2, kind: input, shape index: {}]   ;;  %s920_s3 = inlined_call_operand.vmem [shape: f32[64,32], index: 3, kind: input, shape index: {}]   ;;  %s921_s4 = inlined_call_operand.vmem [shape: f32[64,1], index: 4, kind: input, shape index: {}]   ;;  %s922_s5 = inlined_call_operand.vmem [shape: f32[32,64], index: 5, kind: input, shape index: {}]   ;;  %s923_s6 = inlined_call_operand.vmem [shape: f32[32,1], index: 6, kind: input, shape index: {}]   ;;  %s924_s7 = inlined_call_operand.vmem [shape: f32[2,32], index: 7, kind: input, shape index: {}]   ;;  %s925_s8 = inlined_call_operand.vmem [shape: f32[2,1], index: 8, kind: input, shape index: {}]   ;;  %s926_s9 = inlined_call_operand.hbm [shape: f32[2,128], index: 9, kind: output, shape index: {}]  }
   0x1   :  { %v34_v0 = vld [vmem:[%s917_s0 + $0x8] sm:$0x7]  ;;  %v33_v1 = vld [vmem:[%s917_s0] sm:$0xff]  ;;  %709 = vset.pattern.permute.xlu0 %v735_v4  ;;  %v42_v5 = vld [vmem:[%s919_s2 + $0x18] sm:$0xff]  ;;  %710 = vset.pattern.permute.xlu1 %v735_v4 }
   0x2   :  { %v35_v2 = vld [vmem:[%s918_s1] sm:$0xff]  ;;  %642 = vmatprep.subr.msk.mxu0 %vm76_vm0, %v34_v0  ;;  %v36_v3 = vld [vmem:[%s918_s1 + $0x8] sm:$0xff]  ;;  %v37_v6 = vld [vmem:[%s918_s1 + $0x10] sm:$0xff]  ;;  %60 = vperm.xlu0 %709, %v42_v5  }
   0x3   :  { %646 = vmatprep.mubr.msk.f32.mxu0 %vm63_vm1, %v35_v2  ;;  %643 = vmatpush3.msk.msra.mxu0 %vm76_vm0, %v34_v0  ;;  %v40_v7 = vld [vmem:[%s919_s2 + $0x8] sm:$0xff]  ;;  %v41_v8 = vld [vmem:[%s919_s2 + $0x10] sm:$0xff]  ;;  %v38_v9 = vld [vmem:[%s918_s1 + $0x18] sm:$0xff] }
   0x4   :  { %644 = vmatprep.subr.mxu0 %v33_v1  ;;  %50 = vperm.xlu1 %710, %v40_v7   ;;  %v39_v10 = vld [vmem:[%s919_s2] sm:$0xff] }
   0x5   :  { %645 = vmatpush3.msra.mxu0 %v33_v1 }
   0x6   :  { %647 = vmatmul.mubr.msk.f32.vlgmr.msra.gmra.mxu0 %vm63_vm1, %v36_v3  ;;  %55 = vperm.xlu0 %709, %v41_v8  }
   0x7   :  { %649 = vmatprep.mubr.msk.f32.mxu0 %vm63_vm1, %v37_v6 }
   0x8   :  { %14 = vsyncpa [#allocation3], 0  ;;  %v184_v11 = vld [vmem:[%s921_s4 + $0x38] sm:$0xff]  ;;  %45 = vperm.xlu1 %710, %v39_v10   ;;  %v183_v12 = vld [vmem:[%s921_s4 + $0x30] sm:$0xff]  ;;  %vm225_vm2 = vcmask 261120   ;;  %vm391_vm3 = vcmask 523264  }
   0x9   :  { %v182_v13 = vld [vmem:[%s921_s4 + $0x28] sm:$0xff]  ;;  %v181_v14 = vld [vmem:[%s921_s4 + $0x20] sm:$0xff]  ;;  %v180_v15 = vld [vmem:[%s921_s4 + $0x18] sm:$0xff]  ;;  %vm737_vm4 = vmmov 0   ;;  %s738_s27 = smov [#allocation2]  }
   0xa   :  { %650 = vmatmul.mubr.msk.f32.gmra.mxu0 %vm63_vm1, %v38_v9  ;;  %222 = vperm.xlu0 %709, %v184_v11   ;;  %v179_v16 = vld [vmem:[%s921_s4 + $0x10] sm:$0xff]  ;;  %v178_v17 = vld [vmem:[%s921_s4 + $0x8] sm:$0xff]  ;;  %v177_v18 = vld [vmem:[%s921_s4] sm:$0xff]  ;;  %s581_s4 = sshll.u32 %s738_s27, 4  ;;  %s582_s4 = int_to_ptr.vmem [resolvable:$true] %s581_s4 }
   0xb   :  { %v370_v19 = vld [vmem:[%s923_s6 + $0x18] sm:$0xff]  ;;  %v369_v20 = vld [vmem:[%s923_s6 + $0x10] sm:$0xff]  ;;  %v368_v21 = vld [vmem:[%s923_s6 + $0x8] sm:$0xff]  ;;  %s713_s28 = scalar_lea.vmem %s582_s4, 32  ;;  %p718_p1 = scmp.lt.s32.totalorder %s582_s4, %s582_s4 }
   0xc   :  { %217 = vperm.xlu1 %710, %v183_v12   ;;  %v367_v22 = vld [vmem:[%s923_s6] sm:$0xff]  ;;  %v170_v41 = vld [vmem:[%s920_s3 + $0x8] sm:$0xff]  ;;  %v171_v42 = vld [vmem:[%s920_s3 + $0x10] sm:$0xff]  ;;  %p714_p0 = scmp.ne.s32.totalorder %s582_s4, %s713_s28  ;;  %p719_p2 = scmp.lt.s32.totalorder %s713_s28, %s713_s28 }
   0xd   :  { %v494_v23 = vld [vmem:[%s925_s8] sm:$0x3]  ;;  %v172_v43 = vld [vmem:[%s920_s3 + $0x18] sm:$0xff]  ;;  %v174_v45 = vld [vmem:[%s920_s3 + $0x28] sm:$0xff] }
   0xe   :  { %212 = vperm.xlu0 %709, %v182_v13   ;;  %v169_v24 = vld [vmem:[%s920_s3] sm:$0xff]  ;;  %v175_v46 = vld [vmem:[%s920_s3 + $0x30] sm:$0xff]  ;;  %v176_v47 = vld [vmem:[%s920_s3 + $0x38] sm:$0xff]  ;;  %p720_p3 = por %p719_p2, %p718_p1 }
   0xf   :  { %660 = vmatprep.mubr.msk.f32.mxu1 %vm225_vm2, %v169_v24  ;;  %v173_v44 = vld [vmem:[%s920_s3 + $0x20] sm:$0xff] }
  0x10   :  { %207 = vperm.xlu1 %710, %v181_v14   ;;  %v363_v48 = vld [vmem:[%s922_s5] sm:$0xff]  ;;  %p721_p4 = pnand %p720_p3, %p714_p0 }
  0x11   :  { %688 = vmatprep.mubr.msk.f32.mxu0 %vm391_vm3, %v363_v48 }
  0x12   :  { %202 = vperm.xlu0 %709, %v180_v15  }
  0x14   :  { %197 = vperm.xlu1 %710, %v179_v16  }
  0x16   :  { %192 = vperm.xlu0 %709, %v178_v17   ;;  %v364_v17 = vld [vmem:[%s922_s5 + $0x8] sm:$0xff] }
  0x18   :  { %187 = vperm.xlu1 %710, %v177_v18   ;;  %v365_v18 = vld [vmem:[%s922_s5 + $0x10] sm:$0xff] }
  0x1a   :  { %388 = vperm.xlu0 %709, %v370_v19   ;;  %v366_v19 = vld [vmem:[%s922_s5 + $0x18] sm:$0xff] }
  0x1c   :  { %383 = vperm.xlu1 %710, %v369_v20   ;;  %v736_v20 = vmov 0.0  }
  0x1e   :  { %378 = vperm.xlu0 %709, %v368_v21  }
  0x20   :  { %373 = vperm.xlu1 %710, %v367_v22  }
  0x22   :  { %497 = vperm.xlu0 %709, %v494_v23  }
  0x7d   :  { %v61_v25 = vpop.permute.xlu0 %60 }
  0x7f   :  { %v51_v27 = vpop.permute.xlu1 %50 }
  0x81   :  { %v56_v31 = vpop.permute.xlu0 %55 }
  0x83   :  { %v46_v36 = vpop.permute.xlu1 %45 }
  0x85   :  { %v223_v51 = vpop.permute.xlu0 %222 }
  0x87   :  { %v218_v53 = vpop.permute.xlu1 %217 }
  0x89   :  { %v213_v56 = vpop.permute.xlu0 %212 }
  0x8b   :  { %v208_v58 = vpop.permute.xlu1 %207 }
  0x8d   :  { %v203_v1 = vpop.permute.xlu0 %202 }
  0x8f   :  { %v198_v4 = vpop.permute.xlu1 %197 }
  0x91   :  { %v193_v9 = vpop.permute.xlu0 %192 }
  0x93   :  { %v188_v12 = vpop.permute.xlu1 %187 }
  0x95   :  { %v389_v21 = vpop.permute.xlu0 %388 }
  0x97   :  { %v384_v23 = vpop.permute.xlu1 %383 }
  0xc6   :  { %v648_v26 = vpop.f32.mrf.mxu0 }
  0xc7   :  { %v152_v33 = vadd.f32 %v648_v26, %v51_v27  ;;  %v379_v27 = vpop.permute.xlu0 %378 }
  0xc8   :  { %v146_v28 = vpop.f32.mrf.mxu0 }
  0xc9   :  { %v147_v37 = vadd.f32 %v146_v28, %v46_v36  ;;  %v166_v39 = vmax.f32 %v152_v33, 0.0 }
  0xca   :  { %v651_v29 = vpop.f32.mrf.mxu0 }
  0xcb   :  { %v162_v30 = vadd.f32 %v651_v29, %v61_v25  ;;  %v165_v40 = vmax.f32 %v147_v37, 0.0  ;;  %v493_v37 = vld [vmem:[%s924_s7] sm:$0x3] }
  0xcc   :  { %v156_v32 = vpop.f32.mrf.mxu0 }
  0xcd   :  { %v168_v34 = vmax.f32 %v162_v30, 0.0  ;;  %v157_v35 = vadd.f32 %v156_v32, %v56_v31  ;;  %v374_v32 = vpop.permute.xlu1 %373 }
  0xcf   :  { %v167_v38 = vmax.f32 %v157_v35, 0.0  ;;  %652 = vmatprep.subr.mxu1 %v168_v34 }
  0xd0   :  { %653 = vmatpush3.msra.mxu1 %v168_v34 }
  0xd1   :  { %654 = vmatprep.subr.mxu1 %v167_v38 }
  0xd2   :  { %655 = vmatpush3.msra.mxu1 %v167_v38  ;;  %v498_v38 = vpop.permute.xlu0 %497 }
  0xd3   :  { %656 = vmatprep.subr.mxu1 %v166_v39 }
  0xd4   :  { %657 = vmatpush3.msra.mxu1 %v166_v39 }
  0xd5   :  { %658 = vmatprep.subr.mxu1 %v165_v40 }
  0xd6   :  { %659 = vmatpush3.msra.mxu1 %v165_v40 }
  0xd7   :  { %661 = vmatmul.mubr.msk.f32.vlgmr.msra.gmra.mxu1 %vm225_vm2, %v170_v41  ;;  %694 = vmatprep.subr.mxu1 %v736_v20 }
  0xd8   :  { %663 = vmatprep.mubr.msk.f32.mxu1 %vm225_vm2, %v171_v42 }
  0xdb   :  { %664 = vmatmul.mubr.msk.f32.gmra.mxu1 %vm225_vm2, %v172_v43 }
  0xdc   :  { %666 = vmatprep.mubr.msk.f32.mxu1 %vm225_vm2, %v173_v44 }
  0xdf   :  { %667 = vmatmul.mubr.msk.f32.gmra.mxu1 %vm225_vm2, %v174_v45 }
  0xe0   :  { %669 = vmatprep.mubr.msk.f32.mxu1 %vm225_vm2, %v175_v46 }
  0xe3   :  { %670 = vmatmul.mubr.msk.f32.gmra.mxu1 %vm225_vm2, %v176_v47 }
  0xe4   :  { %702 = vmatprep.mubr.msk.f32.mxu1 %vm737_vm4, %v736_v20 }
 0x197   :  { %v662_v49 = vpop.f32.mrf.mxu1 }
 0x198   :  { %v322_v10 = vadd.f32 %v662_v49, %v193_v9 }
 0x199   :  { %v316_v50 = vpop.f32.mrf.mxu1 }
 0x19a   :  { %v317_v13 = vadd.f32 %v316_v50, %v188_v12  ;;  %v356_v15 = vmax.f32 %v322_v10, 0.0 }
 0x19b   :  { %v665_v52 = vpop.f32.mrf.mxu1 }
 0x19c   :  { %v332_v5 = vadd.f32 %v665_v52, %v203_v1  ;;  %v355_v16 = vmax.f32 %v317_v13, 0.0 }
 0x19d   :  { %v326_v54 = vpop.f32.mrf.mxu1 }
 0x19e   :  { %v327_v7 = vadd.f32 %v326_v54, %v198_v4  ;;  %v358_v11 = vmax.f32 %v332_v5, 0.0 }
 0x19f   :  { %v668_v55 = vpop.f32.mrf.mxu1 }
 0x1a0   :  { %v342_v62 = vadd.f32 %v668_v55, %v213_v56  ;;  %v357_v14 = vmax.f32 %v327_v7, 0.0 }
 0x1a1   :  { %v336_v57 = vpop.f32.mrf.mxu1 }
 0x1a2   :  { %v337_v2 = vadd.f32 %v336_v57, %v208_v58  ;;  %v360_v6 = vmax.f32 %v342_v62, 0.0 }
 0x1a3   :  { %v671_v59 = vpop.f32.mrf.mxu1 }
 0x1a4   :  { %v352_v60 = vadd.f32 %v671_v59, %v223_v51  ;;  %v359_v8 = vmax.f32 %v337_v2, 0.0 }
 0x1a5   :  { %v346_v61 = vpop.f32.mrf.mxu1 }
 0x1a6   :  { %v362_v63 = vmax.f32 %v352_v60, 0.0  ;;  %v347_v0 = vadd.f32 %v346_v61, %v218_v53 }
 0x1a8   :  { %v361_v3 = vmax.f32 %v347_v0, 0.0  ;;  %672 = vmatprep.subr.mxu0 %v362_v63 }
 0x1a9   :  { %673 = vmatpush3.msra.mxu0 %v362_v63 }
 0x1aa   :  { %674 = vmatprep.subr.mxu0 %v361_v3 }
 0x1ab   :  { %675 = vmatpush3.msra.mxu0 %v361_v3 }
 0x1ac   :  { %676 = vmatprep.subr.mxu0 %v360_v6 }
 0x1ad   :  { %677 = vmatpush3.msra.mxu0 %v360_v6 }
 0x1ae   :  { %678 = vmatprep.subr.mxu0 %v359_v8 }
 0x1af   :  { %679 = vmatpush3.msra.mxu0 %v359_v8 }
 0x1b0   :  { %680 = vmatprep.subr.mxu0 %v358_v11 }
 0x1b1   :  { %681 = vmatpush3.msra.mxu0 %v358_v11 }
 0x1b2   :  { %682 = vmatprep.subr.mxu0 %v357_v14 }
 0x1b3   :  { %683 = vmatpush3.msra.mxu0 %v357_v14 }
 0x1b4   :  { %684 = vmatprep.subr.mxu0 %v356_v15 }
 0x1b5   :  { %685 = vmatpush3.msra.mxu0 %v356_v15 }
 0x1b6   :  { %686 = vmatprep.subr.mxu0 %v355_v16 }
 0x1b7   :  { %687 = vmatpush3.msra.mxu0 %v355_v16 }
 0x1b8   :  { %689 = vmatmul.mubr.msk.f32.vlgmr.msra.gmra.mxu0 %vm391_vm3, %v364_v17 }
 0x1b9   :  { %691 = vmatprep.mubr.msk.f32.mxu0 %vm391_vm3, %v365_v18 }
 0x1bc   :  { %692 = vmatmul.mubr.msk.f32.gmra.mxu0 %vm391_vm3, %v366_v19 }
 0x278   :  { %v690_v22 = vpop.f32.mrf.mxu0 }
 0x279   :  { %v476_v29 = vadd.f32 %v690_v22, %v379_v27 }
 0x27a   :  { %v470_v24 = vpop.f32.mrf.mxu0 }
 0x27b   :  { %v471_v33 = vadd.f32 %v470_v24, %v374_v32  ;;  %v490_v35 = vmax.f32 %v476_v29, 0.0 }
 0x27c   :  { %v693_v25 = vpop.f32.mrf.mxu0 }
 0x27d   :  { %v486_v26 = vadd.f32 %v693_v25, %v389_v21  ;;  %v489_v36 = vmax.f32 %v471_v33, 0.0 }
 0x27e   :  { %v480_v28 = vpop.f32.mrf.mxu0 }
 0x27f   :  { %v492_v30 = vmax.f32 %v486_v26, 0.0  ;;  %v481_v31 = vadd.f32 %v480_v28, %v384_v23 }
 0x281   :  { %v491_v34 = vmax.f32 %v481_v31, 0.0  ;;  %695 = vmatpush3.msra.mxu1 %v492_v30 }
 0x282   :  { %696 = vmatprep.subr.mxu1 %v736_v20 }
 0x283   :  { %697 = vmatpush3.msra.mxu1 %v491_v34 }
 0x284   :  { %698 = vmatprep.subr.mxu1 %v736_v20 }
 0x285   :  { %699 = vmatpush3.msra.mxu1 %v490_v35 }
 0x286   :  { %700 = vmatprep.subr.mxu1 %v736_v20 }
 0x287   :  { %701 = vmatpush3.msra.mxu1 %v489_v36 }
 0x288   :  { %703 = vmatmul.mubr.msk.f32.vlgmr.msra.gmra.mxu1 %vm225_vm2, %v493_v37 }
 0x348   :  { %v569_v39 = vpop.f32.mrf.mxu1 }
 0x349   :  { %v570_v40 = vadd.f32 %v569_v39, %v498_v38 }
 0x34a   :  { %v704_v41 = vpop.f32.mrf.mxu1 }
 0x34b   :  { %711 = vtanh.f32 %v570_v40 }
 0x358   :  { %v712_v42 = vpop.eup %711 }
 0x359   :  { %574 = vst [vmem:[#allocation2] sm:$0x3] %v712_v42 }
 0x35a   :  { %724 = shalt.err (!%p721_p4)
}
 0x35b   :  { %584 = dma.vmem_to_hbm [thread:$0]  %s582_s4, 32, %s926_s9, [#allocation3]  }
 0x35c   :  { %733 = dma.done.wait [#allocation3], 32  }
 0x35d   :  { %734 = vsyncadd [#allocation3], 4294967264 }
 0x35e   :  { %588 = vsyncpa [#allocation3], 1 }

</bundles_post_ra>
